<compile_context>
chip_gen: v7x
topology: tpu7x:2x2x1
jax: 0.10.0
libtpu: 0.0.40
codegen_flags: <defaults>
</compile_context>

<pallas_src>
import functools

import numpy as np
import jax
import jax.numpy as jnp
from jax.experimental import pallas as pl
from jax.experimental.pallas import tpu as pltpu


def _round_up(x, m):
    return ((x + m - 1) // m) * m


def _conv_bn_relu_kernel(xc_ref, xn_ref, w_ref, shift_ref, o_ref, *,
                         k, stride, cin, tl):
    """One (Cout, TL) output tile of fused Conv1d + BatchNorm(eval) + ReLU.

    xc_ref    : (1, stride*Cin, TL)  current input tile (polyphase layout)
    xn_ref    : (1, stride*Cin, TL)  next input tile (supplies the right halo)
    w_ref     : (k, Cout, Cin)       per-tap weights with BN scale folded in
    shift_ref : (Cout, 1)            fused conv-bias/BN shift (f32)
    o_ref     : (1, Cout, TL)        output tile (TL lanes -> lane-dense store)
    """
    cout = o_ref.shape[1]
    # (stride*Cin, 2*TL): current tile + halo.  All tap slices below are
    # static slices of this value (q <= (k-1)//stride, offsets known at trace
    # time), so no unaligned dynamic lane indexing is needed.
    win = jnp.concatenate([xc_ref[0], xn_ref[0]], axis=-1)

    acc = jnp.zeros((cout, tl), jnp.float32)
    for t in range(k):                       # k is small & static -> unrolled
        r = t % stride                       # polyphase index
        q = t // stride                      # lane shift within the phase
        x_t = win[r * cin:(r + 1) * cin, q:q + tl]            # (Cin, TL) bf16
        acc = acc + jnp.dot(w_ref[t], x_t,
                            preferred_element_type=jnp.float32)
    y = acc + shift_ref[...]                 # f32 epilogue: + shift, ReLU
    o_ref[0] = jnp.maximum(y, 0.0).astype(o_ref.dtype)


def conv1d_block_forward(x, p, k, stride, *, eps=1e-5, tl_max=512,
                         compute_dtype=jnp.bfloat16, out_dtype=None):
    """One Conv1DBlock: x (N, Cin, L) -> (N, Cout, L_out), inference mode."""
    if out_dtype is None:
        out_dtype = x.dtype
    N, Cin, L = x.shape
    Cout = p["w"].shape[0]
    pad = k // 2                               # PyTorch padding=kernel_size//2
    L_out = (L + 2 * pad - k) // stride + 1

    # Lane tile: multiple of 128 for lane-dense output stores.  Per-tile VMEM
    # is tiny (channels are small), so 512 is safe on v5e/v6e/v7x alike.
    tl = max(128, min(tl_max, _round_up(L_out, 128)))
    n_tiles = (L_out + tl - 1) // tl
    L_out_pad = n_tiles * tl
    # One extra tile of zeros so the "next tile" halo block is always in range.
    L_phase = (n_tiles + 1) * tl
    L_ext = L_phase * stride
    assert L_ext >= L + 2 * pad and (k - 1) // stride <= tl

    x_pad = jnp.pad(x, ((0, 0), (0, 0), (pad, L_ext - L - pad)))
    if stride == 1:
        xp = x_pad                                            # single phase
    else:
        # Polyphase split: xp[n, r*Cin + ci, j] = x_pad[n, ci, j*stride + r]
        xp = (x_pad.reshape(N, Cin, L_phase, stride)
                   .transpose(0, 3, 1, 2)
                   .reshape(N, stride * Cin, L_phase))
    xp = xp.astype(compute_dtype)             # bf16 at the pallas_call boundary

    # Fold conv bias + BatchNorm(eval, running stats) into scale/shift and the
    # scale into the weights, so the kernel epilogue is just add + ReLU.
    s = p["gamma"] * jax.lax.rsqrt(p["var"] + eps)
    w_fold = (jnp.transpose(p["w"], (2, 0, 1)) * s[None, :, None]
              ).astype(compute_dtype)                         # (k, Cout, Cin)
    shift = ((p["b"] - p["mean"]) * s + p["beta"]
             ).reshape(Cout, 1).astype(jnp.float32)

    in_item = np.dtype(compute_dtype).itemsize
    out_item = np.dtype(out_dtype).itemsize
    cost = pl.CostEstimate(
        flops=2 * N * L_out_pad * k * Cin * Cout,
        transcendentals=0,
        bytes_accessed=(2 * N * stride * Cin * L_phase * in_item   # x (cur+halo)
                        + k * Cout * Cin * in_item                 # weights
                        + Cout * 4                                 # shift
                        + N * Cout * L_out_pad * out_item),        # output
    )

    kernel = functools.partial(_conv_bn_relu_kernel,
                               k=k, stride=stride, cin=Cin, tl=tl)
    out = pl.pallas_call(
        kernel,
        out_shape=jax.ShapeDtypeStruct((N, Cout, L_out_pad), out_dtype),
        grid=(N, n_tiles),
        in_specs=[
            pl.BlockSpec((1, stride * Cin, tl), lambda n, i: (n, 0, i)),
            pl.BlockSpec((1, stride * Cin, tl), lambda n, i: (n, 0, i + 1)),
            pl.BlockSpec((k, Cout, Cin), lambda n, i: (0, 0, 0)),   # resident
            pl.BlockSpec((Cout, 1), lambda n, i: (0, 0)),           # resident
        ],
        out_specs=pl.BlockSpec((1, Cout, tl), lambda n, i: (n, 0, i)),
        compiler_params=pltpu.CompilerParams(
            dimension_semantics=("parallel", "parallel"),
            vmem_limit_bytes=32 * 1024 * 1024,
        ),
        cost_estimate=cost,
    )(xp, xp, w_fold, shift)

    # TODO(synk): training-mode dropout would need pltpu.prng_seed /
    # prng_random_bits inside the kernel; eval-mode dropout is the identity.
    return out[:, :, :L_out]


def conv_branch_forward(x_ncl, params, kernel_sizes, strides,
                        compute_dtype=jnp.bfloat16):
    # Input/output follow PyTorch (N, C, L); no layout transposes needed.
    x = x_ncl
    n = len(params)
    for i, (p, k, s) in enumerate(zip(params, kernel_sizes, strides)):
        x = conv1d_block_forward(
            x, p, k, s, compute_dtype=compute_dtype,
            out_dtype=x_ncl.dtype if i == n - 1 else compute_dtype)
    return x


def init_conv_branch_params(key, in_channels, out_channels, kernel_sizes):
    params = []
    in_c = in_channels
    for out_c, k in zip(out_channels, kernel_sizes):
        key, k0, k1, k2, k3, k4, k5 = jax.random.split(key, 7)
        fan_in = in_c * k
        params.append(
            dict(
                w=jax.random.normal(k0, (out_c, in_c, k), jnp.float32)
                / jnp.sqrt(float(fan_in)),
                b=0.1 * jax.random.normal(k1, (out_c,), jnp.float32),
                gamma=1.0 + 0.1 * jax.random.normal(k2, (out_c,), jnp.float32),
                beta=0.1 * jax.random.normal(k3, (out_c,), jnp.float32),
                mean=0.1 * jax.random.normal(k4, (out_c,), jnp.float32),
                var=jax.random.uniform(k5, (out_c,), jnp.float32, 0.5, 1.5),
            )
        )
        in_c = out_c
    return params


def _ref_conv_branch(x, params, kernel_sizes, strides,
                     compute_dtype=jnp.bfloat16, eps=1e-5):
    """Pure-JAX reference mirroring the kernel's bf16 quantization points."""
    n = len(params)
    for idx, (p, k, stride) in enumerate(zip(params, kernel_sizes, strides)):
        N, Cin, L = x.shape
        Cout = p["w"].shape[0]
        pad = k // 2
        L_out = (L + 2 * pad - k) // stride + 1
        s = p["gamma"] * jax.lax.rsqrt(p["var"] + eps)
        w_fold = (jnp.transpose(p["w"], (2, 0, 1)) * s[None, :, None]
                  ).astype(compute_dtype).astype(jnp.float32)
        shift = (p["b"] - p["mean"]) * s + p["beta"]
        xq = x.astype(compute_dtype).astype(jnp.float32)
        x_pad = jnp.pad(xq, ((0, 0), (0, 0), (pad, pad)))
        acc = jnp.zeros((N, Cout, L_out), jnp.float32)
        for t in range(k):
            xt = x_pad[:, :, t:t + (L_out - 1) * stride + 1:stride]
            acc = acc + jnp.einsum("oc,ncl->nol", w_fold[t], xt)
        y = jnp.maximum(acc + shift[None, :, None], 0.0)
        x = y if idx == n - 1 else y.astype(compute_dtype)
    return x.astype(jnp.float32)


if __name__ == "__main__":
    key = jax.random.PRNGKey(0)
    kx, kp = jax.random.split(key)

    # ConvBranch(in_channels=4, out_channels=[8, 16], kernel_sizes=[3, 5],
    #            strides=[1, 2], drs=[0.1, 0.1]) applied to (N, C_in, L).
    N, C_in, L = 2, 4, 16
    out_channels = [8, 16]
    kernel_sizes = [3, 5]
    strides = [1, 2]

    x = jax.random.normal(kx, (N, C_in, L), jnp.float32)
    params = init_conv_branch_params(kp, C_in, out_channels, kernel_sizes)

    fwd = jax.jit(lambda xx, pp: conv_branch_forward(xx, pp, kernel_sizes,
                                                     strides))
    y = fwd(x, params)
    jax.block_until_ready(y)
    assert y.shape == (N, out_channels[-1], 8), y.shape   # L: 16 -> 16 -> 8

    y_ref = _ref_conv_branch(x, params, kernel_sizes, strides)
    err = float(jnp.max(jnp.abs(y - y_ref)))
    assert err < 5e-2, f"max abs error {err}"
    print("KERNEL_OK")
</pallas_src>

<mosaic_0001>
module attributes {stable_mosaic.version = 11 : i64} {
  func.func @_conv_bn_relu_kernel(%arg0: i32, %arg1: i32, %arg2: memref<1x4x128xbf16, #tpu.memory_space<vmem>>, %arg3: memref<1x4x128xbf16, #tpu.memory_space<vmem>>, %arg4: memref<3x8x4xbf16, #tpu.memory_space<vmem>>, %arg5: memref<8x1xf32, #tpu.memory_space<vmem>>, %arg6: memref<1x8x128xbf16, #tpu.memory_space<vmem>>) attributes {dimension_semantics = [#tpu.dimension_semantics<parallel>, #tpu.dimension_semantics<parallel>], iteration_bounds = array<i64: 2, 1>, scalar_prefetch = 0 : i64, scratch_operands = 0 : i64, tpu.core_type = #tpu.core_type<tc>, window_params = [{transform_indices = @transform_0, window_bounds = array<i64: 1, 4, 128>}, {transform_indices = @transform_1, window_bounds = array<i64: 1, 4, 128>}, {pipeline_mode = #tpu.pipeline_mode<synchronous>, transform_indices = @transform_2, window_bounds = array<i64: 3, 8, 4>}, {pipeline_mode = #tpu.pipeline_mode<synchronous>, transform_indices = @transform_3, window_bounds = array<i64: 8, 1>}, {transform_indices = @transform_4, window_bounds = array<i64: 1, 8, 128>}]} {
    %c0 = arith.constant 0 : index
    %c0_0 = arith.constant 0 : index
    %c0_1 = arith.constant 0 : index
    %0 = vector.load %arg2[%c0, %c0_0, %c0_1] : memref<1x4x128xbf16, #tpu.memory_space<vmem>>, vector<1x4x128xbf16>
    %1 = vector.shape_cast %0 : vector<1x4x128xbf16> to vector<4x128xbf16>
    %c0_2 = arith.constant 0 : index
    %c0_3 = arith.constant 0 : index
    %c0_4 = arith.constant 0 : index
    %2 = vector.load %arg3[%c0_2, %c0_3, %c0_4] : memref<1x4x128xbf16, #tpu.memory_space<vmem>>, vector<1x4x128xbf16>
    %3 = vector.shape_cast %2 : vector<1x4x128xbf16> to vector<4x128xbf16>
    %4 = tpu.concatenate %1, %3 in 1 : vector<4x128xbf16>, vector<4x128xbf16> -> vector<4x256xbf16>
    %cst = arith.constant 0.000000e+00 : f32
    %5 = vector.broadcast %cst : f32 to vector<8x128xf32>
    %6 = vector.extract_strided_slice %4 {offsets = [0, 0], sizes = [4, 128], strides = [1, 1]} : vector<4x256xbf16> to vector<4x128xbf16>
    %c0_5 = arith.constant 0 : index
    %c0_6 = arith.constant 0 : index
    %c0_7 = arith.constant 0 : index
    %7 = vector.load %arg4[%c0_5, %c0_6, %c0_7] : memref<3x8x4xbf16, #tpu.memory_space<vmem>>, vector<1x8x4xbf16>
    %8 = vector.shape_cast %7 : vector<1x8x4xbf16> to vector<8x4xbf16>
    %cst_8 = arith.constant dense<0.000000e+00> : vector<8x128xf32>
    %9 = tpu.matmul %8, %6, %cst_8 {dimension_numbers = #tpu.dot_dimension_numbers<[1], [0], [0], [1], [0, 0, 1, 1], [], []>} : vector<8x4xbf16>, vector<4x128xbf16>, vector<8x128xf32> -> vector<8x128xf32>
    %10 = arith.addf %5, %9 : vector<8x128xf32>
    %11 = vector.extract_strided_slice %4 {offsets = [0, 1], sizes = [4, 128], strides = [1, 1]} : vector<4x256xbf16> to vector<4x128xbf16>
    %c1 = arith.constant 1 : index
    %c0_9 = arith.constant 0 : index
    %c0_10 = arith.constant 0 : index
    %12 = vector.load %arg4[%c1, %c0_9, %c0_10] : memref<3x8x4xbf16, #tpu.memory_space<vmem>>, vector<1x8x4xbf16>
    %13 = vector.shape_cast %12 : vector<1x8x4xbf16> to vector<8x4xbf16>
    %cst_11 = arith.constant dense<0.000000e+00> : vector<8x128xf32>
    %14 = tpu.matmul %13, %11, %cst_11 {dimension_numbers = #tpu.dot_dimension_numbers<[1], [0], [0], [1], [0, 0, 1, 1], [], []>} : vector<8x4xbf16>, vector<4x128xbf16>, vector<8x128xf32> -> vector<8x128xf32>
    %15 = arith.addf %10, %14 : vector<8x128xf32>
    %16 = vector.extract_strided_slice %4 {offsets = [0, 2], sizes = [4, 128], strides = [1, 1]} : vector<4x256xbf16> to vector<4x128xbf16>
    %c2 = arith.constant 2 : index
    %c0_12 = arith.constant 0 : index
    %c0_13 = arith.constant 0 : index
    %17 = vector.load %arg4[%c2, %c0_12, %c0_13] : memref<3x8x4xbf16, #tpu.memory_space<vmem>>, vector<1x8x4xbf16>
    %18 = vector.shape_cast %17 : vector<1x8x4xbf16> to vector<8x4xbf16>
    %cst_14 = arith.constant dense<0.000000e+00> : vector<8x128xf32>
    %19 = tpu.matmul %18, %16, %cst_14 {dimension_numbers = #tpu.dot_dimension_numbers<[1], [0], [0], [1], [0, 0, 1, 1], [], []>} : vector<8x4xbf16>, vector<4x128xbf16>, vector<8x128xf32> -> vector<8x128xf32>
    %20 = arith.addf %15, %19 : vector<8x128xf32>
    %c0_15 = arith.constant 0 : index
    %c0_16 = arith.constant 0 : index
    %21 = vector.load %arg5[%c0_15, %c0_16] : memref<8x1xf32, #tpu.memory_space<vmem>>, vector<8x1xf32>
    %22 = vector.broadcast %21 : vector<8x1xf32> to vector<8x128xf32>
    %23 = arith.addf %20, %22 : vector<8x128xf32>
    %cst_17 = arith.constant 0.000000e+00 : f32
    %24 = vector.broadcast %cst_17 : f32 to vector<8x128xf32>
    %25 = arith.maximumf %23, %24 : vector<8x128xf32>
    %26 = arith.truncf %25 : vector<8x128xf32> to vector<8x128xbf16>
    %c0_18 = arith.constant 0 : index
    %c0_19 = arith.constant 0 : index
    %c0_20 = arith.constant 0 : index
    %27 = vector.load %arg6[%c0_18, %c0_19, %c0_20] : memref<1x8x128xbf16, #tpu.memory_space<vmem>>, vector<1x8x128xbf16>
    %28 = vector.shape_cast %27 : vector<1x8x128xbf16> to vector<8x128xbf16>
    %29 = vector.shape_cast %26 : vector<8x128xbf16> to vector<1x8x128xbf16>
    tpu.vector_store %arg6[%c0_18, %c0_19, %c0_20], %29 {strides = array<i32>} : memref<1x8x128xbf16, #tpu.memory_space<vmem>>, vector<1x8x128xbf16>,
    return
  }
  func.func @transform_0(%arg0: i32, %arg1: i32) -> (i32, i32, i32) {
    %c0_i32 = arith.constant 0 : i32
    %c0_i32_0 = arith.constant 0 : i32
    return %arg0, %c0_i32, %arg1 : i32, i32, i32
  }
  func.func @transform_1(%arg0: i32, %arg1: i32) -> (i32, i32, i32) {
    %c1_i32 = arith.constant 1 : i32
    %0 = arith.addi %arg1, %c1_i32 : i32
    %c0_i32 = arith.constant 0 : i32
    %c0_i32_0 = arith.constant 0 : i32
    return %arg0, %c0_i32, %0 : i32, i32, i32
  }
  func.func @transform_2(%arg0: i32, %arg1: i32) -> (i32, i32, i32) {
    %c0_i32 = arith.constant 0 : i32
    %c0_i32_0 = arith.constant 0 : i32
    %c0_i32_1 = arith.constant 0 : i32
    %c0_i32_2 = arith.constant 0 : i32
    return %c0_i32, %c0_i32_0, %c0_i32_1 : i32, i32, i32
  }
  func.func @transform_3(%arg0: i32, %arg1: i32) -> (i32, i32) {
    %c0_i32 = arith.constant 0 : i32
    %c0_i32_0 = arith.constant 0 : i32
    %c0_i32_1 = arith.constant 0 : i32
    return %c0_i32, %c0_i32_0 : i32, i32
  }
  func.func @transform_4(%arg0: i32, %arg1: i32) -> (i32, i32, i32) {
    %c0_i32 = arith.constant 0 : i32
    %c0_i32_0 = arith.constant 0 : i32
    return %arg0, %c0_i32, %arg1 : i32, i32, i32
  }
}

module attributes {stable_mosaic.version = 11 : i64} {
  func.func @_conv_bn_relu_kernel(%arg0: i32, %arg1: i32, %arg2: memref<1x16x128xbf16, #tpu.memory_space<vmem>>, %arg3: memref<1x16x128xbf16, #tpu.memory_space<vmem>>, %arg4: memref<5x16x8xbf16, #tpu.memory_space<vmem>>, %arg5: memref<16x1xf32, #tpu.memory_space<vmem>>, %arg6: memref<1x16x128xf32, #tpu.memory_space<vmem>>) attributes {dimension_semantics = [#tpu.dimension_semantics<parallel>, #tpu.dimension_semantics<parallel>], iteration_bounds = array<i64: 2, 1>, scalar_prefetch = 0 : i64, scratch_operands = 0 : i64, tpu.core_type = #tpu.core_type<tc>, window_params = [{transform_indices = @transform_0, window_bounds = array<i64: 1, 16, 128>}, {transform_indices = @transform_1, window_bounds = array<i64: 1, 16, 128>}, {pipeline_mode = #tpu.pipeline_mode<synchronous>, transform_indices = @transform_2, window_bounds = array<i64: 5, 16, 8>}, {pipeline_mode = #tpu.pipeline_mode<synchronous>, transform_indices = @transform_3, window_bounds = array<i64: 16, 1>}, {transform_indices = @transform_4, window_bounds = array<i64: 1, 16, 128>}]} {
    %c0 = arith.constant 0 : index
    %c0_0 = arith.constant 0 : index
    %c0_1 = arith.constant 0 : index
    %0 = vector.load %arg2[%c0, %c0_0, %c0_1] : memref<1x16x128xbf16, #tpu.memory_space<vmem>>, vector<1x16x128xbf16>
    %1 = vector.shape_cast %0 : vector<1x16x128xbf16> to vector<16x128xbf16>
    %c0_2 = arith.constant 0 : index
    %c0_3 = arith.constant 0 : index
    %c0_4 = arith.constant 0 : index
    %2 = vector.load %arg3[%c0_2, %c0_3, %c0_4] : memref<1x16x128xbf16, #tpu.memory_space<vmem>>, vector<1x16x128xbf16>
    %3 = vector.shape_cast %2 : vector<1x16x128xbf16> to vector<16x128xbf16>
    %4 = tpu.concatenate %1, %3 in 1 : vector<16x128xbf16>, vector<16x128xbf16> -> vector<16x256xbf16>
    %cst = arith.constant 0.000000e+00 : f32
    %5 = vector.broadcast %cst : f32 to vector<16x128xf32>
    %6 = vector.extract_strided_slice %4 {offsets = [0, 0], sizes = [8, 128], strides = [1, 1]} : vector<16x256xbf16> to vector<8x128xbf16>
    %c0_5 = arith.constant 0 : index
    %c0_6 = arith.constant 0 : index
    %c0_7 = arith.constant 0 : index
    %7 = vector.load %arg4[%c0_5, %c0_6, %c0_7] : memref<5x16x8xbf16, #tpu.memory_space<vmem>>, vector<1x16x8xbf16>
    %8 = vector.shape_cast %7 : vector<1x16x8xbf16> to vector<16x8xbf16>
    %cst_8 = arith.constant dense<0.000000e+00> : vector<16x128xf32>
    %9 = tpu.matmul %8, %6, %cst_8 {dimension_numbers = #tpu.dot_dimension_numbers<[1], [0], [0], [1], [0, 0, 1, 1], [], []>} : vector<16x8xbf16>, vector<8x128xbf16>, vector<16x128xf32> -> vector<16x128xf32>
    %10 = arith.addf %5, %9 : vector<16x128xf32>
    %11 = vector.extract_strided_slice %4 {offsets = [8, 0], sizes = [8, 128], strides = [1, 1]} : vector<16x256xbf16> to vector<8x128xbf16>
    %c1 = arith.constant 1 : index
    %c0_9 = arith.constant 0 : index
    %c0_10 = arith.constant 0 : index
    %12 = vector.load %arg4[%c1, %c0_9, %c0_10] : memref<5x16x8xbf16, #tpu.memory_space<vmem>>, vector<1x16x8xbf16>
    %13 = vector.shape_cast %12 : vector<1x16x8xbf16> to vector<16x8xbf16>
    %cst_11 = arith.constant dense<0.000000e+00> : vector<16x128xf32>
    %14 = tpu.matmul %13, %11, %cst_11 {dimension_numbers = #tpu.dot_dimension_numbers<[1], [0], [0], [1], [0, 0, 1, 1], [], []>} : vector<16x8xbf16>, vector<8x128xbf16>, vector<16x128xf32> -> vector<16x128xf32>
    %15 = arith.addf %10, %14 : vector<16x128xf32>
    %16 = vector.extract_strided_slice %4 {offsets = [0, 1], sizes = [8, 128], strides = [1, 1]} : vector<16x256xbf16> to vector<8x128xbf16>
    %c2 = arith.constant 2 : index
    %c0_12 = arith.constant 0 : index
    %c0_13 = arith.constant 0 : index
    %17 = vector.load %arg4[%c2, %c0_12, %c0_13] : memref<5x16x8xbf16, #tpu.memory_space<vmem>>, vector<1x16x8xbf16>
    %18 = vector.shape_cast %17 : vector<1x16x8xbf16> to vector<16x8xbf16>
    %cst_14 = arith.constant dense<0.000000e+00> : vector<16x128xf32>
    %19 = tpu.matmul %18, %16, %cst_14 {dimension_numbers = #tpu.dot_dimension_numbers<[1], [0], [0], [1], [0, 0, 1, 1], [], []>} : vector<16x8xbf16>, vector<8x128xbf16>, vector<16x128xf32> -> vector<16x128xf32>
    %20 = arith.addf %15, %19 : vector<16x128xf32>
    %21 = vector.extract_strided_slice %4 {offsets = [8, 1], sizes = [8, 128], strides = [1, 1]} : vector<16x256xbf16> to vector<8x128xbf16>
    %c3 = arith.constant 3 : index
    %c0_15 = arith.constant 0 : index
    %c0_16 = arith.constant 0 : index
    %22 = vector.load %arg4[%c3, %c0_15, %c0_16] : memref<5x16x8xbf16, #tpu.memory_space<vmem>>, vector<1x16x8xbf16>
    %23 = vector.shape_cast %22 : vector<1x16x8xbf16> to vector<16x8xbf16>
    %cst_17 = arith.constant dense<0.000000e+00> : vector<16x128xf32>
    %24 = tpu.matmul %23, %21, %cst_17 {dimension_numbers = #tpu.dot_dimension_numbers<[1], [0], [0], [1], [0, 0, 1, 1], [], []>} : vector<16x8xbf16>, vector<8x128xbf16>, vector<16x128xf32> -> vector<16x128xf32>
    %25 = arith.addf %20, %24 : vector<16x128xf32>
    %26 = vector.extract_strided_slice %4 {offsets = [0, 2], sizes = [8, 128], strides = [1, 1]} : vector<16x256xbf16> to vector<8x128xbf16>
    %c4 = arith.constant 4 : index
    %c0_18 = arith.constant 0 : index
    %c0_19 = arith.constant 0 : index
    %27 = vector.load %arg4[%c4, %c0_18, %c0_19] : memref<5x16x8xbf16, #tpu.memory_space<vmem>>, vector<1x16x8xbf16>
    %28 = vector.shape_cast %27 : vector<1x16x8xbf16> to vector<16x8xbf16>
    %cst_20 = arith.constant dense<0.000000e+00> : vector<16x128xf32>
    %29 = tpu.matmul %28, %26, %cst_20 {dimension_numbers = #tpu.dot_dimension_numbers<[1], [0], [0], [1], [0, 0, 1, 1], [], []>} : vector<16x8xbf16>, vector<8x128xbf16>, vector<16x128xf32> -> vector<16x128xf32>
    %30 = arith.addf %25, %29 : vector<16x128xf32>
    %c0_21 = arith.constant 0 : index
    %c0_22 = arith.constant 0 : index
    %31 = vector.load %arg5[%c0_21, %c0_22] : memref<16x1xf32, #tpu.memory_space<vmem>>, vector<16x1xf32>
    %32 = vector.broadcast %31 : vector<16x1xf32> to vector<16x128xf32>
    %33 = arith.addf %30, %32 : vector<16x128xf32>
    %cst_23 = arith.constant 0.000000e+00 : f32
    %34 = vector.broadcast %cst_23 : f32 to vector<16x128xf32>
    %35 = arith.maximumf %33, %34 : vector<16x128xf32>
    %c0_24 = arith.constant 0 : index
    %c0_25 = arith.constant 0 : index
    %c0_26 = arith.constant 0 : index
    %36 = vector.load %arg6[%c0_24, %c0_25, %c0_26] : memref<1x16x128xf32, #tpu.memory_space<vmem>>, vector<1x16x128xf32>
    %37 = vector.shape_cast %36 : vector<1x16x128xf32> to vector<16x128xf32>
    %38 = vector.shape_cast %35 : vector<16x128xf32> to vector<1x16x128xf32>
    tpu.vector_store %arg6[%c0_24, %c0_25, %c0_26], %38 {strides = array<i32>} : memref<1x16x128xf32, #tpu.memory_space<vmem>>, vector<1x16x128xf32>,
    return
  }
  func.func @transform_0(%arg0: i32, %arg1: i32) -> (i32, i32, i32) {
    %c0_i32 = arith.constant 0 : i32
    %c0_i32_0 = arith.constant 0 : i32
    return %arg0, %c0_i32, %arg1 : i32, i32, i32
  }
  func.func @transform_1(%arg0: i32, %arg1: i32) -> (i32, i32, i32) {
    %c1_i32 = arith.constant 1 : i32
    %0 = arith.addi %arg1, %c1_i32 : i32
    %c0_i32 = arith.constant 0 : i32
    %c0_i32_0 = arith.constant 0 : i32
    return %arg0, %c0_i32, %0 : i32, i32, i32
  }
  func.func @transform_2(%arg0: i32, %arg1: i32) -> (i32, i32, i32) {
    %c0_i32 = arith.constant 0 : i32
    %c0_i32_0 = arith.constant 0 : i32
    %c0_i32_1 = arith.constant 0 : i32
    %c0_i32_2 = arith.constant 0 : i32
    return %c0_i32, %c0_i32_0, %c0_i32_1 : i32, i32, i32
  }
  func.func @transform_3(%arg0: i32, %arg1: i32) -> (i32, i32) {
    %c0_i32 = arith.constant 0 : i32
    %c0_i32_0 = arith.constant 0 : i32
    %c0_i32_1 = arith.constant 0 : i32
    return %c0_i32, %c0_i32_0 : i32, i32
  }
  func.func @transform_4(%arg0: i32, %arg1: i32) -> (i32, i32, i32) {
    %c0_i32 = arith.constant 0 : i32
    %c0_i32_0 = arith.constant 0 : i32
    return %arg0, %c0_i32, %arg1 : i32, i32, i32
  }
}

</mosaic_0001>

<bundles_post_ra>
// kernel: _lambda_.2
= control target key start
LH: loop header
LB: loop body
LE: loop exit
PB: predicated region body
PF: predicated region fallthrough
CT: control target
= control target key end

     0   :  { %s662_s15 = smov 0   ;;  %s664_s16 = smov 0   ;;  %s724_s0 = inlined_call_operand.vmem [shape: bf16[2,4,256], index: 0, kind: input, shape index: {}, may-alias: {0,1}]   ;;  %s725_s1 = inlined_call_operand.vmem [shape: bf16[2,4,256], index: 1, kind: input, shape index: {}, may-alias: {0,1}]   ;;  %s726_s2 = inlined_call_operand.vmem [shape: bf16[3,8,4], index: 2, kind: input, shape index: {}]   ;;  %s727_s3 = inlined_call_operand.vmem [shape: f32[8,1], index: 3, kind: input, shape index: {}]   ;;  %s728_s4 = inlined_call_operand.vmem [shape: bf16[2,8,128], index: 4, kind: output, shape index: {}]  }
   0x1   :  { %s666_s17 = smov 0  }
   0x2 LB: > { %s26_s18 = sadd.s32 1, %s626_s16  ;;  %p537_p0 = scmp.ge.s32.totalorder %s630_s17, 1  ;;  %s630_s17 = sphi %s666_s17, %s14_s17   ;;  %s626_s16 = sphi %s664_s16, %s730_s16   ;;  %s622_s15 = sphi %s662_s15, %s729_s15  }
   0x3   : > { %p28_p1 = scmp.ge.s32.totalorder %s26_s18, 2  ;;  %p200_p2 = scmp.lt.s32.totalorder %s630_s17, 3 }
   0x5   : > { %s732_s18 = smov (%p28_p1, %s26_s18), 0  ;;  %p201_p3 = pnand %p537_p0, %p200_p2 }
   0x6   : > { %p240_p4 = scmp.lt.s32.totalorder (!%p201_p3), %s622_s15, 1  ;;  %v632_v0 = vmov (!%p201_p3), 0.0   ;;  %vm633_vm0 = vmmov (!%p201_p3), 0   ;;  %vm283_vm1 = vcmask (!%p201_p3), 1041408   ;;  %s634_s27 = smov (!%p201_p3), 126   ;;  %vm279_vm2 = vcmask (!%p201_p3), 31744  }
   0x7   : > { %204 = sbr.rel (%p201_p3) target bundleno = 371 (0x173), region = 36  ;;  %560 = vmatprep.subr.bf16.mxu0 (!%p201_p3), %v632_v0  ;;  %566 = vmatprep.subr.bf16.mxu1 (!%p201_p3), %v632_v0  ;;  %s635_s28 = smov (!%p201_p3), 127   ;;  %v268_v4 = vld [vmem:[%s726_s2] sm:$0xf] (!%p201_p3)  ;;  %v636_v5 = vmov (!%p201_p3), 0   ;;  %vm379_vm3 = vcmask (!%p201_p3), 1031168  }
   0x8   : > { %562 = vmatprep.mubr.msk.bf16.mxu0 (!%p201_p3), %vm633_vm0, %v632_v0  ;;  %568 = vmatprep.mubr.msk.bf16.mxu1 (!%p201_p3), %vm633_vm0, %v632_v0  ;;  %v428_v6 = vld [vmem:[%s727_s3] sm:$0xff] (!%p201_p3)  ;;  %vm277_vm4 = vcmask (!%p201_p3), 1039360   ;;  %v546_v16 = vld [vmem:[%s726_s2 + $0x8] sm:$0xf] (!%p201_p3) }
   0x9   : > { %607 = vset.pattern.permute.xlu0 (!%p201_p3), %v636_v5  ;;  %v543_v14 = vld [vmem:[%s726_s2 + $0x4] sm:$0xf] (!%p201_p3) }
   0xe   : > { %s734_s15 = smov (!%p240_p4, %s622_s15), 1 }
   0xf   : > { %s682_s19 = sshll.u32 %s734_s15, 2 }
  0x10   : > { %s247_s22 = scalar_lea.vmem %s724_s0, %s682_s19  ;;  %s552_s23 = sadd.s32 2, %s682_s19 }
  0x11   : > { %v266_v1 = vld [vmem:[%s247_s22] sm:$0x3]  ;;  %s256_s26 = scalar_lea.vmem %s725_s1, %s552_s23  ;;  %s264_s13 = scalar_lea.vmem %s728_s4, %s682_s19 }
  0x12   : > { %375 = vrot.lane.b32.xlu1 %v266_v1, %s634_s27  ;;  %273 = vrot.lane.b32.xlu0 %v266_v1, %s635_s28  ;;  %v331_v2 = vsel %vm283_vm1, %v266_v1, 0  ;;  %v267_v3 = vld [vmem:[%s256_s26] sm:$0x3] }
  0x13   : > { %567 = vmatpush3.bf16.msra.mxu1 %v331_v2 }
  0x16   : > { %377 = vrot.lane.b32.xlu1 %v267_v3, %s634_s27  ;;  %275 = vrot.lane.b32.xlu0 %v267_v3, %s635_s28 }
  0x17   : > { %569 = vmatmul.mubr.msk.bf16.vlgmr.msra.gmra.mrb[0].mxu1 %vm279_vm2, %v268_v4 }
  0x1a   : > { %431 = vperm.xlu0 %607, %v428_v6  }
  0x84   : > { %v376_v7 = vpop.permute.xlu1 %375  ;;  %v274_v8 = vpop.permute.xlu0 %273 }
  0x88   : > { %v378_v9 = vpop.permute.xlu1 %377  ;;  %v276_v10 = vpop.permute.xlu0 %275 }
  0x89   : > { %v380_v11 = vsel %vm379_vm3, %v376_v7, %v378_v9  ;;  %v278_v12 = vsel %vm277_vm4, %v274_v8, %v276_v10 }
  0x8a   : > { %v285_v13 = vsel %vm283_vm1, %v278_v12, 0  ;;  %v385_v15 = vsel %vm283_vm1, %v380_v11, 0 }
  0x8b   : > { %561 = vmatpush3.bf16.msra.mxu0 %v285_v13 }
  0x8c   : > { %572 = vmatprep.subr.bf16.mxu0 %v632_v0 }
  0x8e   : > { %563 = vmatmul.mubr.msk.bf16.vlgmr.msra.gmra.mrb[0].mxu0 %vm279_vm2, %v543_v14 }
  0x8f   : > { %573 = vmatpush3.bf16.msra.mxu0 %v385_v15  ;;  %574 = vmatprep.mubr.msk.bf16.mxu0 %vm633_vm0, %v632_v0 }
  0x96   : > { %575 = vmatmul.mubr.msk.bf16.vlgmr.msra.gmra.mrb[4].mxu0 %vm279_vm2, %v546_v16 }
  0x99   : > { %v432_v27 = vpop.permute.xlu0 %431 }
  0xea   : > { %v367_v17 = vpop.f32.mrb[0].mxu1 }
  0xeb   : > { %v570_v18 = vpop.f32.mrb[1].mxu1 }
  0xec   : > { %v370_v19 = vpop.f32.mrb[2].mxu1 }
  0xed   : > { %v571_v20 = vpop.f32.mrb[3].mxu1 }
 0x161   : > { %v321_v21 = vpop.f32.mrb[0].mxu0 }
 0x162   : > { %v564_v22 = vpop.f32.mrb[1].mxu0  ;;  %v368_v23 = vadd.f32 %v367_v17, %v321_v21 }
 0x163   : > { %v324_v24 = vpop.f32.mrb[2].mxu0 }
 0x164   : > { %v565_v25 = vpop.f32.mrb[3].mxu0 }
 0x169   : > { %v421_v26 = vpop.f32.mrb[4].mxu0 }
 0x16a   : > { %v427_v28 = vadd.f32 %v421_v26, %v368_v23  ;;  %v576_v29 = vpop.f32.mrb[5].mxu0 }
 0x16b   : > { %v424_v30 = vpop.f32.mrb[6].mxu0 }
 0x16c   : > { %v434_v31 = vadd.f32 %v432_v27, %v427_v28  ;;  %v577_v32 = vpop.f32.mrb[7].mxu0 }
 0x16e   : > { %v435_v33 = vmax.f32 %v434_v31, 0.0 }
 0x170   : > { %v436_v34 = vpack.c.bf16 %v435_v33, %v435_v33 }
 0x172   : > { %437 = vst [vmem:[%s264_s13] sm:$0xf] %v436_v34 }
 0x173 PF: > { %s14_s17 = sadd.s32 1, %s630_s17   ;;  %s729_s15 = smov %s626_s16 }
 0x174   : > { %p11_p5 = scmp.ge.s32.totalorder %s14_s17, 4   ;;  %s730_s16 = smov %s732_s18 }
 0x176   :  { %13 = sbr.rel (!%p11_p5) target bundleno = 2 (0x2), region = 71 }

// kernel: _lambda_.3
= control target key start
LH: loop header
LB: loop body
LE: loop exit
PB: predicated region body
PF: predicated region fallthrough
CT: control target
= control target key end

     0   :  { %s986_s15 = smov 0   ;;  %s988_s16 = smov 0   ;;  %s1101_s0 = inlined_call_operand.vmem [shape: bf16[2,16,256], index: 0, kind: input, shape index: {}, may-alias: {0,1}]   ;;  %s1102_s1 = inlined_call_operand.vmem [shape: bf16[2,16,256], index: 1, kind: input, shape index: {}, may-alias: {0,1}]   ;;  %s1103_s2 = inlined_call_operand.vmem [shape: bf16[5,16,8], index: 2, kind: input, shape index: {}]   ;;  %s1104_s3 = inlined_call_operand.vmem [shape: f32[16,1], index: 3, kind: input, shape index: {}]   ;;  %s1105_s4 = inlined_call_operand.vmem [shape: f32[2,16,128], index: 4, kind: output, shape index: {}]  }
   0x1   :  { %s990_s17 = smov 0   ;;  %s992_s18 = smov 0  }
   0x2   :  { %s994_s19 = smov 0  }
   0x3 LB: > { %s26_s20 = sadd.s32 1, %s950_s18  ;;  %p42_p1 = scmp.ne.s32.totalorder %s942_s16, %s938_s15  ;;  %s954_s19 = sphi %s994_s19, %s14_s19   ;;  %s950_s18 = sphi %s992_s18, %s1110_s18   ;;  %s946_s17 = sphi %s990_s17, %s1109_s17   ;;  %s942_s16 = sphi %s988_s16, %s1108_s16   ;;  %s938_s15 = sphi %s986_s15, %s1107_s15  }
   0x4   : > { %p28_p0 = scmp.ge.s32.totalorder %s26_s20, 2  ;;  %p43_p2 = scmp.eq.s32.totalorder %s954_s19, 0 }
   0x5   : > { %s35_s23 = sadd.s32 1, %s942_s16  ;;  %p783_p5 = scmp.ge.s32.totalorder %s954_s19, 2 }
   0x6   : > { %s1112_s20 = smov (%p28_p0, %s26_s20), 0  ;;  %p1017_p3 = por %p43_p2, %p42_p1 }
   0x7   : > { %s30_s22 = ssub.s32 %s950_s18, %s1112_s20  ;;  %174 = sbr.rel (%p783_p5) target bundleno = 28 (0x1c), region = 24 }
   0x8   : > { %p33_p4 = scmp.eq.s32.totalorder %s30_s22, 0 }
   0xa   : > { %s1025_s24 = scalar_select %p33_p4, %s942_s16, %s35_s23  }
   0xe   : > { %177 = sbr.rel (!%p1017_p3) target bundleno = 21 (0x15), region = 28  ;;  %s179_s25 = sand.u32 (%p1017_p3), 1, %s942_s16  }
   0xf   : > { %s819_s26 = sshll.u32 (%p1017_p3), %s950_s18, 4  ;;  %s784_s27 = sshll.u32 (%p1017_p3), %s179_s25, 3 }
  0x10   : > { %s185_s30 = scalar_lea.vmem (%p1017_p3), %s1101_s0, %s819_s26  ;;  %s181_s5 = scalar_lea.vmem (%p1017_p3), [#allocation2], %s784_s27 }
  0x11   : > { %v201_v0 = vld [vmem:[%s185_s30] sm:$0xf] (%p1017_p3)  ;;  %v203_v1 = vld [vmem:[%s185_s30 + $0x8] sm:$0xf] (%p1017_p3) }
  0x12   : > { %202 = vst [vmem:[%s181_s5] sm:$0xf] (%p1017_p3), %v201_v0  ;;  %204 = vst [vmem:[%s181_s5 + $0x4] sm:$0xf] (%p1017_p3), %v203_v1 }
  0x15 PF: > { %231 = sbr.rel (!%p1017_p3) target bundleno = 28 (0x1c), region = 69  ;;  %s233_s6 = sand.u32 (%p1017_p3), 1, %s942_s16  }
  0x16   : > { %s820_s7 = sshll.u32 (%p1017_p3), %s950_s18, 4  ;;  %s787_s8 = sshll.u32 (%p1017_p3), %s233_s6, 3 }
  0x17   : > { %s712_s11 = scalar_lea.vmem (%p1017_p3), %s1102_s1, %s820_s7  ;;  %s235_s12 = scalar_lea.vmem (%p1017_p3), [#allocation3], %s787_s8 }
  0x18   : > { %v790_v2 = vld [vmem:[%s712_s11 + $0x4] sm:$0xf] (%p1017_p3)  ;;  %v791_v3 = vld [vmem:[%s712_s11 + $0xc] sm:$0xf] (%p1017_p3) }
  0x19   : > { %257 = vst [vmem:[%s235_s12] sm:$0xf] (%p1017_p3), %v790_v2  ;;  %259 = vst [vmem:[%s235_s12 + $0x4] sm:$0xf] (%p1017_p3), %v791_v3 }
  0x1c PF: > { %p792_p6 = scmp.ge.s32.totalorder %s954_s19, 1  ;;  %p285_p7 = scmp.lt.s32.totalorder %s954_s19, 3 }
  0x1e   : > { %p286_p8 = pnand %p792_p6, %p285_p7 }
  0x1f   : > { %s292_s13 = sand.u32 (!%p286_p8), 1, %s938_s15   ;;  %v956_v4 = vmov (!%p286_p8), 0.0   ;;  %vm370_vm0 = vcmask (!%p286_p8), 1043456   ;;  %vm957_vm1 = vmmov (!%p286_p8), 0   ;;  %s958_s23 = smov (!%p286_p8), 127   ;;  %v912_v9 = vld [vmem:[%s1103_s2] sm:$0xff] (!%p286_p8)  }
  0x20   : > { %289 = sbr.rel (%p286_p8) target bundleno = 388 (0x184), region = 110  ;;  %s793_s14 = sshll.u32 (!%p286_p8), %s292_s13, 3  ;;  %832 = vmatprep.subr.bf16.mxu0 (!%p286_p8), %v956_v4  ;;  %838 = vmatprep.subr.bf16.mxu1 (!%p286_p8), %v956_v4  ;;  %v911_v10 = vld [vmem:[%s1103_s2 + $0x8] sm:$0xff] (!%p286_p8)   ;;  %vm366_vm2 = vcmask (!%p286_p8), 64512   ;;  %v959_v13 = vmov (!%p286_p8), 0   ;;  %v656_v14 = vld [vmem:[%s1104_s3] sm:$0xff] (!%p286_p8) }
  0x21   : > { %834 = vmatprep.mubr.msk.bf16.mxu0 (!%p286_p8), %vm957_vm1, %v956_v4  ;;  %840 = vmatprep.mubr.msk.bf16.mxu1 (!%p286_p8), %vm957_vm1, %v956_v4  ;;  %s294_s21 = scalar_lea.vmem (!%p286_p8), [#allocation2], %s793_s14  ;;  %s301_s22 = scalar_lea.vmem (!%p286_p8), [#allocation3], %s793_s14  ;;  %v657_v15 = vld [vmem:[%s1104_s3 + $0x8] sm:$0xff] (!%p286_p8)  ;;  %vm479_vm3 = vcmask (!%p286_p8), 1039360   ;;  %v913_v22 = vld [vmem:[%s1103_s2 + $0x10] sm:$0xff] (!%p286_p8)   ;;  %v914_v26 = vld [vmem:[%s1103_s2 + $0x18] sm:$0xff] (!%p286_p8)  }
  0x22   : > { %v909_v5 = vld [vmem:[%s294_s21] sm:$0xff] (!%p286_p8)   ;;  %v910_v6 = vld [vmem:[%s301_s22] sm:$0xff] (!%p286_p8)   ;;  %907 = vset.pattern.permute.xlu0 (!%p286_p8), %v959_v13  ;;  %s960_s28 = smov (!%p286_p8), 126   ;;  %908 = vset.pattern.permute.xlu1 (!%p286_p8), %v959_v13  ;;  %vm605_vm4 = vcmask (!%p286_p8), 1031168   ;;  %p332_p9 = scmp.lt.s32.totalorder (!%p286_p8), %s946_s17, 1 }
  0x23   : > { %475 = vrot.lane.b32.xlu0 (!%p286_p8), %v909_v5, %s958_s23  ;;  %v365_v7 = vrot.slane (!%p286_p8), %v909_v5, 4  ;;  %v424_v8 = vsel (!%p286_p8), %vm370_vm0, %v909_v5, 0  ;;  %v538_v11 = vrot.slane (!%p286_p8), %v910_v6, 4  ;;  %v915_v30 = vld [vmem:[%s1103_s2 + $0x20] sm:$0xff] (!%p286_p8)  }
  0x24   : > { %839 = vmatpush3.bf16.msra.mxu1 (!%p286_p8), %v424_v8 }
  0x25   : > { %539 = vrot.lane.b32.xlu1 (!%p286_p8), %v365_v7, %s958_s23  ;;  %v372_v12 = vsel (!%p286_p8), %vm370_vm0, %v365_v7, 0  ;;  %850 = vmatprep.subr.bf16.mxu1 (!%p286_p8), %v956_v4 }
  0x26   : > { %833 = vmatpush3.bf16.msra.mxu0 (!%p286_p8), %v372_v12 }
  0x27   : > { %477 = vrot.lane.b32.xlu0 %v910_v6, %s958_s23  ;;  %841 = vmatmul.mubr.msk.bf16.vlgmr.msra.gmra.mrb[0].mxu1 %vm366_vm2, %v912_v9  ;;  %s1114_s17 = smov (!%p332_p9, %s946_s17), 1 }
  0x28   : > { %844 = vmatprep.subr.bf16.mxu0 %v956_v4  ;;  %852 = vmatprep.mubr.msk.bf16.mxu1 %vm957_vm1, %v956_v4  ;;  %s821_s13 = sshll.u32 %s1114_s17, 4 }
  0x29   : > { %541 = vrot.lane.b32.xlu1 %v538_v11, %s958_s23  ;;  %835 = vmatmul.mubr.msk.bf16.vlgmr.msra.gmra.mrb[0].mxu0 %vm366_vm2, %v911_v10  ;;  %s339_s22 = scalar_lea.vmem %s1105_s4, %s821_s13 }
  0x2a   : > { %846 = vmatprep.mubr.msk.bf16.mxu0 %vm957_vm1, %v956_v4 }
  0x2b   : > { %601 = vrot.lane.b32.xlu0 %v909_v5, %s960_s28 }
  0x2d   : > { %603 = vrot.lane.b32.xlu1 %v910_v6, %s960_s28 }
  0x2f   : > { %660 = vperm.xlu0 %907, %v656_v14  }
  0x31   : > { %665 = vperm.xlu1 %908, %v657_v15  }
  0x95   : > { %v476_v16 = vpop.permute.xlu0 %475 }
  0x97   : > { %v540_v17 = vpop.permute.xlu1 %539 }
  0x99   : > { %v478_v18 = vpop.permute.xlu0 %477 }
  0x9a   : > { %v480_v19 = vsel %vm479_vm3, %v476_v16, %v478_v18 }
  0x9b   : > { %v485_v20 = vsel %vm370_vm0, %v480_v19, 0  ;;  %v542_v21 = vpop.permute.xlu1 %541 }
  0x9c   : > { %v543_v23 = vsel %vm479_vm3, %v540_v17, %v542_v21  ;;  %845 = vmatpush3.bf16.msra.mxu0 %v485_v20 }
  0x9d   : > { %v548_v24 = vsel %vm370_vm0, %v543_v23, 0  ;;  %v602_v25 = vpop.permute.xlu0 %601  ;;  %856 = vmatprep.subr.bf16.mxu0 %v956_v4 }
  0x9e   : > { %851 = vmatpush3.bf16.msra.mxu1 %v548_v24 }
  0x9f   : > { %847 = vmatmul.mubr.msk.bf16.vlgmr.msra.gmra.mrb[4].mxu0 %vm366_vm2, %v913_v22  ;;  %v604_v27 = vpop.permute.xlu1 %603 }
  0xa0   : > { %v606_v28 = vsel %vm605_vm4, %v602_v25, %v604_v27  ;;  %858 = vmatprep.mubr.msk.bf16.mxu0 %vm957_vm1, %v956_v4 }
  0xa1   : > { %853 = vmatmul.mubr.msk.bf16.vlgmr.msra.gmra.mrb[4].mxu1 %vm366_vm2, %v914_v26  ;;  %v611_v29 = vsel %vm370_vm0, %v606_v28, 0 }
  0xa2   : > { %857 = vmatpush3.bf16.msra.mxu0 %v611_v29 }
  0xa7   : > { %859 = vmatmul.mubr.msk.bf16.vlgmr.msra.gmra.mrb[8].mxu0 %vm366_vm2, %v915_v30 }
  0xae   : > { %v661_v54 = vpop.permute.xlu0 %660 }
  0xb0   : > { %v666_v58 = vpop.permute.xlu1 %665 }
  0xfa   : > { %v460_v31 = vpop.f32.mrb[0].mxu1 }
  0xfb   : > { %v842_v32 = vpop.f32.mrb[1].mxu1 }
  0xfc   : > { %v408_v33 = vpop.f32.mrb[0].mxu0  ;;  %v463_v34 = vpop.f32.mrb[2].mxu1 }
  0xfd   : > { %v836_v35 = vpop.f32.mrb[1].mxu0  ;;  %v461_v36 = vadd.f32 %v460_v31, %v408_v33  ;;  %v843_v37 = vpop.f32.mrb[3].mxu1 }
  0xfe   : > { %v411_v38 = vpop.f32.mrb[2].mxu0 }
  0xff   : > { %v837_v39 = vpop.f32.mrb[3].mxu0  ;;  %v464_v40 = vadd.f32 %v463_v34, %v411_v38 }
 0x172   : > { %v521_v41 = vpop.f32.mrb[4].mxu0 }
 0x173   : > { %v528_v42 = vadd.f32 %v521_v41, %v461_v36  ;;  %v848_v43 = vpop.f32.mrb[5].mxu0 }
 0x174   : > { %v524_v44 = vpop.f32.mrb[6].mxu0  ;;  %v584_v45 = vpop.f32.mrb[4].mxu1 }
 0x175   : > { %v529_v46 = vadd.f32 %v524_v44, %v464_v40  ;;  %v591_v47 = vadd.f32 %v584_v45, %v528_v42  ;;  %v854_v48 = vpop.f32.mrb[5].mxu1  ;;  %v849_v49 = vpop.f32.mrb[7].mxu0 }
 0x176   : > { %v587_v50 = vpop.f32.mrb[6].mxu1 }
 0x177   : > { %v592_v51 = vadd.f32 %v587_v50, %v529_v46  ;;  %v855_v52 = vpop.f32.mrb[7].mxu1 }
 0x17a   : > { %v647_v53 = vpop.f32.mrb[8].mxu0 }
 0x17b   : > { %v654_v55 = vadd.f32 %v647_v53, %v591_v47  ;;  %v860_v56 = vpop.f32.mrb[9].mxu0 }
 0x17c   : > { %v650_v57 = vpop.f32.mrb[10].mxu0 }
 0x17d   : > { %v668_v59 = vadd.f32 %v661_v54, %v654_v55  ;;  %v655_v60 = vadd.f32 %v650_v57, %v592_v51  ;;  %v861_v61 = vpop.f32.mrb[11].mxu0 }
 0x17f   : > { %v670_v62 = vmax.f32 %v668_v59, 0.0  ;;  %v669_v63 = vadd.f32 %v666_v58, %v655_v60 }
 0x181   : > { %672 = vst [vmem:[%s339_s22] sm:$0xff] %v670_v62  ;;  %v671_v0 = vmax.f32 %v669_v63, 0.0 }
 0x183   : > { %673 = vst [vmem:[%s339_s22 + $0x8] sm:$0xff] %v671_v0 }
 0x184 PF: > { %s14_s19 = sadd.s32 1, %s954_s19   ;;  %s1107_s15 = smov %s942_s16 }
 0x185   : > { %p11_p10 = scmp.ge.s32.totalorder %s14_s19, 4   ;;  %s1108_s16 = smov %s1025_s24 }
 0x186   : > { %s1109_s17 = smov %s950_s18  ;;  %s1110_s18 = smov %s1112_s20 }
 0x187   :  { %13 = sbr.rel (!%p11_p10) target bundleno = 3 (0x3), region = 165 }

</bundles_post_ra>
